<compile_context>
chip_gen: v7x
topology: tpu7x:2x2x1
jax: 0.10.0
libtpu: 0.0.40
codegen_flags: <defaults>
</compile_context>

<pallas_src>
import functools

import jax
import jax.numpy as jnp
from jax.experimental import pallas as pl
from jax.experimental.pallas import tpu as pltpu


def _round_up(x, m):
    return (x + m - 1) // m * m


# -------------------------- pltpu.roll direction probe -----------------------
@functools.lru_cache(maxsize=None)
def _roll_is_numpy_compatible():
    """True  -> pltpu.roll(x, s, axis)[..., i] == x[..., (i - s) % L]  (np.roll)
       False -> opposite rotation direction
       None  -> probe failed; use an unambiguous slice+concat shift instead."""
    try:
        x = jnp.tile(jnp.arange(128, dtype=jnp.float32), (8, 1))

        def k(x_ref, o_ref):
            o_ref[...] = pltpu.roll(x_ref[...], 1, axis=1)

        y = pl.pallas_call(
            k, out_shape=jax.ShapeDtypeStruct((8, 128), jnp.float32))(x)
        v = float(jax.block_until_ready(y)[0, 0])
        if v == 127.0:
            return True
        if v == 1.0:
            return False
    except Exception:
        pass
    return None


def _shift_left(x, d, np_compat):
    """Return y with y[..., q] = x[..., q + d] for q < L - d (tail is don't-care)."""
    if d == 0:
        return x
    L = x.shape[-1]
    if np_compat is True:
        return pltpu.roll(x, (L - d) % L, axis=1)
    if np_compat is False:
        return pltpu.roll(x, d % L, axis=1)
    # Fallback: circular shift built from slices (unambiguous semantics).
    return jnp.concatenate([x[:, d:], x[:, :d]], axis=1)


# ----------------------------- Pallas kernel -------------------------------
def _make_fused_kernel(cin, taps, np_compat):
    def kernel(planes_ref, w_ref, b_ref, o_ref):
        # planes_ref: (1, 4*cin, M)   bf16  parity planes of one image (streamed)
        # w_ref:      (9, Cout_p, cin) bf16 per-tap conv weights       (resident)
        # b_ref:      (Cout_p, 1)     f32   bias column                (resident)
        # o_ref:      (1, Cout_p, M)  bf16  output block (NCHW order, flat H*W)
        acc = None
        for t, (p, d) in enumerate(taps):
            tap = planes_ref[0, p * cin:(p + 1) * cin, :]          # (cin, M)
            tap = _shift_left(tap, d, np_compat)                   # align to output lanes
            part = jnp.dot(w_ref[t], tap, preferred_element_type=jnp.float32)
            acc = part if acc is None else acc + part
        acc = acc + b_ref[...]                                     # bias along lanes
        o_ref[0] = jnp.maximum(acc, 0.0).astype(o_ref.dtype)
    return kernel


@functools.lru_cache(maxsize=None)
def _vmem_limit_bytes():
    mib = 1024 * 1024
    try:
        cap = int(pltpu.get_tpu_info().vmem_capacity_bytes)
    except Exception:
        cap = 64 * mib                     # conservative: assume smallest (v7x) VMEM
    # ~48 MiB on 64 MiB parts (v7x), ~96 MiB on 128 MiB parts (v5e/v6e).
    return int(max(32 * mib, min(96 * mib, (cap * 3) // 4)))


def _fused_conv(planes, w_taps, bias_col, *, cin, cout_p, taps, np_compat):
    n, planes_rows, m = planes.shape
    kernel = _make_fused_kernel(cin, taps, np_compat)

    cost = pl.CostEstimate(
        flops=2 * n * m * 9 * cin * cout_p,
        transcendentals=0,
        bytes_accessed=int(planes.size * 2 + w_taps.size * 2
                           + bias_col.size * 4 + n * cout_p * m * 2),
    )

    return pl.pallas_call(
        kernel,
        out_shape=jax.ShapeDtypeStruct((n, cout_p, m), jnp.bfloat16),
        grid_spec=pltpu.PrefetchScalarGridSpec(
            num_scalar_prefetch=0,
            grid=(n,),                                             # one image per step
            in_specs=[
                pl.BlockSpec((1, planes_rows, m), lambda i: (i, 0, 0)),  # streamed planes
                pl.BlockSpec(w_taps.shape, lambda i: (0, 0, 0)),         # resident weights
                pl.BlockSpec(bias_col.shape, lambda i: (0, 0)),          # resident bias
            ],
            out_specs=pl.BlockSpec((1, cout_p, m), lambda i: (i, 0, 0)),
        ),
        compiler_params=pltpu.CompilerParams(
            dimension_semantics=("parallel",),     # shard images across v7x's 2 TCs
            vmem_limit_bytes=_vmem_limit_bytes(),
        ),
        cost_estimate=cost,
    )(planes, w_taps, bias_col)


# --------------------------- module wrapper ---------------------------------
class MotionConvBlock:
    """JAX/Pallas port of the PyTorch MotionConvBlock (ZeroPad2d + Conv2d(3x3, s=2) + ReLU)."""

    def __init__(self, in_channels, out_channels, padding, key):
        self.in_channels = in_channels
        self.out_channels = out_channels
        # nn.ZeroPad2d: int -> all four sides; tuple -> (left, right, top, bottom)
        if isinstance(padding, int):
            self.pad = (padding, padding, padding, padding)
        else:
            self.pad = tuple(padding)

        k_w, k_b = jax.random.split(key)
        fan_in = in_channels * 3 * 3
        bound = 1.0 / float(fan_in) ** 0.5
        # nn.Conv2d-shaped params: weight (Cout, Cin, 3, 3), bias (Cout,)
        self.weight = jax.random.uniform(
            k_w, (out_channels, in_channels, 3, 3), jnp.float32, -bound, bound)
        self.bias = jax.random.uniform(
            k_b, (out_channels,), jnp.float32, -bound, bound)
        # Resolve pltpu.roll's rotation direction once (eagerly, outside jit).
        self._roll_np_compat = _roll_is_numpy_compatible()

    @functools.partial(jax.jit, static_argnums=0)
    def __call__(self, x):
        # x: (N, Cin, H, W), float32 (NCHW, PyTorch convention)
        N, Cin, H, W = x.shape
        Cout = self.out_channels
        left, right, top, bottom = self.pad

        Hp, Wp = H + top + bottom, W + left + right
        Ho = (Hp - 3) // 2 + 1
        Wo = (Wp - 3) // 2 + 1
        Hq, Wq = Ho + 1, Wo + 1            # extended grid so the +1 row/col taps exist
        Mimg = Hq * Wq
        M = _round_up(Mimg, 128)           # lane-dense per-image tile width
        Cout_p = _round_up(Cout, 8)

        # One input-sized pass: ZeroPad2d (+ at most one extra zero row/col so the
        # parity planes cover the Hq x Wq grid), bf16 cast, stride-2 space-to-depth:
        #   planes[n, (a*2+b)*Cin + c, r*Wq + j] = xpad[n, c, 2r+a, 2j+b]
        xq = jnp.pad(x.astype(jnp.bfloat16),
                     ((0, 0), (0, 0),
                      (top, bottom + 2 * Hq - Hp),
                      (left, right + 2 * Wq - Wp)))
        planes = xq.reshape(N, Cin, Hq, 2, Wq, 2)
        planes = planes.transpose(0, 3, 5, 1, 2, 4).reshape(N, 4 * Cin, Mimg)
        planes = jnp.pad(planes, ((0, 0), (0, 0), (0, M - Mimg)))

        # Per-tap weights (9, Cout_p, Cin) bf16 (tap order ky-major) and bias column.
        w = jnp.pad(self.weight, ((0, Cout_p - Cout), (0, 0), (0, 0), (0, 0)))
        w_taps = w.transpose(2, 3, 0, 1).reshape(9, Cout_p, Cin).astype(jnp.bfloat16)
        bias_col = jnp.pad(self.bias, (0, Cout_p - Cout)).reshape(Cout_p, 1)

        # Tap (ky, kx) -> (parity plane index, flat lane shift) in the extended grid.
        taps = tuple(((ky % 2) * 2 + (kx % 2), (ky // 2) * Wq + (kx // 2))
                     for ky in range(3) for kx in range(3))

        out = _fused_conv(planes, w_taps, bias_col, cin=Cin, cout_p=Cout_p,
                          taps=taps, np_compat=self._roll_np_compat)

        # Only remaining XLA pass: drop pad channels and the extended row/col and
        # cast to f32.  The kernel output is already batch/channel-major (NCHW) --
        # no transpose needed.
        out = out[:, :Cout, :Mimg].reshape(N, Cout, Hq, Wq)[:, :, :Ho, :Wo]
        return out.astype(jnp.float32)


# ------------------------------- reference ----------------------------------
def reference_forward(block, x):
    left, right, top, bottom = block.pad
    xpad = jnp.pad(x, ((0, 0), (0, 0), (top, bottom), (left, right)))
    out = jax.lax.conv_general_dilated(
        xpad, block.weight, window_strides=(2, 2), padding="VALID",
        dimension_numbers=("NCHW", "OIHW", "NCHW"))
    out = out + block.bias.reshape(1, -1, 1, 1)
    return jnp.maximum(out, 0.0)


# --------------------------------- main --------------------------------------
if __name__ == "__main__":
    key = jax.random.PRNGKey(0)
    k_param, k_x = jax.random.split(key)

    N, Cin, H, W = 2, 4, 16, 16
    Cout, padding = 8, 1

    block = MotionConvBlock(Cin, Cout, padding, k_param)
    x = jax.random.normal(k_x, (N, Cin, H, W), jnp.float32)

    y = block(x)
    y = jax.block_until_ready(y)

    y_ref = reference_forward(block, x)
    assert y.shape == y_ref.shape, (y.shape, y_ref.shape)
    # bf16 MXU operands + bf16 kernel store with f32 accumulation -> loosened tolerance
    # vs the f32 reference (acceptable for inference).
    assert jnp.allclose(y, y_ref, atol=2e-2, rtol=2e-2), "mismatch vs reference"

    print("KERNEL_OK")
</pallas_src>

<mosaic_0001>
module attributes {stable_mosaic.version = 11 : i64} {
  func.func @k(%arg0: memref<8x128xf32, #tpu.memory_space<vmem>>, %arg1: memref<8x128xf32, #tpu.memory_space<vmem>>) attributes {dimension_semantics = [], scalar_prefetch = 0 : i64, scratch_operands = 0 : i64, tpu.core_type = #tpu.core_type<tc>} {
    %c0 = arith.constant 0 : index
    %c0_0 = arith.constant 0 : index
    %0 = vector.load %arg0[%c0, %c0_0] : memref<8x128xf32, #tpu.memory_space<vmem>>, vector<8x128xf32>
    %c1_i32 = arith.constant 1 : i32
    %1 = tpu.dynamic_rotate %0 by %c1_i32 dim 1 : vector<8x128xf32>, i32 -> vector<8x128xf32>
    %c0_1 = arith.constant 0 : index
    %c0_2 = arith.constant 0 : index
    %2 = vector.load %arg1[%c0_1, %c0_2] : memref<8x128xf32, #tpu.memory_space<vmem>>, vector<8x128xf32>
    tpu.vector_store %arg1[%c0_1, %c0_2], %1 {strides = array<i32>} : memref<8x128xf32, #tpu.memory_space<vmem>>, vector<8x128xf32>,
    return
  }
}

module attributes {stable_mosaic.version = 11 : i64} {
  func.func @kernel(%arg0: i32, %arg1: memref<1x16x128xbf16, #tpu.memory_space<vmem>>, %arg2: memref<9x8x4xbf16, #tpu.memory_space<vmem>>, %arg3: memref<8x1xf32, #tpu.memory_space<vmem>>, %arg4: memref<1x8x128xbf16, #tpu.memory_space<vmem>>) attributes {dimension_semantics = [#tpu.dimension_semantics<parallel>], iteration_bounds = array<i64: 2>, scalar_prefetch = 0 : i64, scratch_operands = 0 : i64, tpu.core_type = #tpu.core_type<tc>, window_params = [{transform_indices = @transform_0, window_bounds = array<i64: 1, 16, 128>}, {pipeline_mode = #tpu.pipeline_mode<synchronous>, transform_indices = @transform_1, window_bounds = array<i64: 9, 8, 4>}, {pipeline_mode = #tpu.pipeline_mode<synchronous>, transform_indices = @transform_2, window_bounds = array<i64: 8, 1>}, {transform_indices = @transform_3, window_bounds = array<i64: 1, 8, 128>}]} {
    %c0 = arith.constant 0 : index
    %c0_0 = arith.constant 0 : index
    %c0_1 = arith.constant 0 : index
    %0 = vector.load %arg1[%c0, %c0_0, %c0_1] : memref<1x16x128xbf16, #tpu.memory_space<vmem>>, vector<1x4x128xbf16>
    %1 = vector.shape_cast %0 : vector<1x4x128xbf16> to vector<4x128xbf16>
    %c0_2 = arith.constant 0 : index
    %c0_3 = arith.constant 0 : index
    %c0_4 = arith.constant 0 : index
    %2 = vector.load %arg2[%c0_2, %c0_3, %c0_4] : memref<9x8x4xbf16, #tpu.memory_space<vmem>>, vector<1x8x4xbf16>
    %3 = vector.shape_cast %2 : vector<1x8x4xbf16> to vector<8x4xbf16>
    %cst = arith.constant dense<0.000000e+00> : vector<8x128xf32>
    %4 = tpu.matmul %3, %1, %cst {dimension_numbers = #tpu.dot_dimension_numbers<[1], [0], [0], [1], [0, 0, 1, 1], [], []>} : vector<8x4xbf16>, vector<4x128xbf16>, vector<8x128xf32> -> vector<8x128xf32>
    %c0_5 = arith.constant 0 : index
    %c4 = arith.constant 4 : index
    %c0_6 = arith.constant 0 : index
    %5 = vector.load %arg1[%c0_5, %c4, %c0_6] : memref<1x16x128xbf16, #tpu.memory_space<vmem>>, vector<1x4x128xbf16>
    %6 = vector.shape_cast %5 : vector<1x4x128xbf16> to vector<4x128xbf16>
    %c1 = arith.constant 1 : index
    %c0_7 = arith.constant 0 : index
    %c0_8 = arith.constant 0 : index
    %7 = vector.load %arg2[%c1, %c0_7, %c0_8] : memref<9x8x4xbf16, #tpu.memory_space<vmem>>, vector<1x8x4xbf16>
    %8 = vector.shape_cast %7 : vector<1x8x4xbf16> to vector<8x4xbf16>
    %cst_9 = arith.constant dense<0.000000e+00> : vector<8x128xf32>
    %9 = tpu.matmul %8, %6, %cst_9 {dimension_numbers = #tpu.dot_dimension_numbers<[1], [0], [0], [1], [0, 0, 1, 1], [], []>} : vector<8x4xbf16>, vector<4x128xbf16>, vector<8x128xf32> -> vector<8x128xf32>
    %10 = arith.addf %4, %9 : vector<8x128xf32>
    %c0_10 = arith.constant 0 : index
    %c0_11 = arith.constant 0 : index
    %c0_12 = arith.constant 0 : index
    %11 = vector.load %arg1[%c0_10, %c0_11, %c0_12] : memref<1x16x128xbf16, #tpu.memory_space<vmem>>, vector<1x4x128xbf16>
    %12 = vector.shape_cast %11 : vector<1x4x128xbf16> to vector<4x128xbf16>
    %13 = vector.extract_strided_slice %12 {offsets = [0, 1], sizes = [4, 127], strides = [1, 1]} : vector<4x128xbf16> to vector<4x127xbf16>
    %14 = vector.extract_strided_slice %12 {offsets = [0, 0], sizes = [4, 1], strides = [1, 1]} : vector<4x128xbf16> to vector<4x1xbf16>
    %15 = tpu.concatenate %13, %14 in 1 : vector<4x127xbf16>, vector<4x1xbf16> -> vector<4x128xbf16>
    %c2 = arith.constant 2 : index
    %c0_13 = arith.constant 0 : index
    %c0_14 = arith.constant 0 : index
    %16 = vector.load %arg2[%c2, %c0_13, %c0_14] : memref<9x8x4xbf16, #tpu.memory_space<vmem>>, vector<1x8x4xbf16>
    %17 = vector.shape_cast %16 : vector<1x8x4xbf16> to vector<8x4xbf16>
    %cst_15 = arith.constant dense<0.000000e+00> : vector<8x128xf32>
    %18 = tpu.matmul %17, %15, %cst_15 {dimension_numbers = #tpu.dot_dimension_numbers<[1], [0], [0], [1], [0, 0, 1, 1], [], []>} : vector<8x4xbf16>, vector<4x128xbf16>, vector<8x128xf32> -> vector<8x128xf32>
    %19 = arith.addf %10, %18 : vector<8x128xf32>
    %c0_16 = arith.constant 0 : index
    %c8 = arith.constant 8 : index
    %c0_17 = arith.constant 0 : index
    %20 = vector.load %arg1[%c0_16, %c8, %c0_17] : memref<1x16x128xbf16, #tpu.memory_space<vmem>>, vector<1x4x128xbf16>
    %21 = vector.shape_cast %20 : vector<1x4x128xbf16> to vector<4x128xbf16>
    %c3 = arith.constant 3 : index
    %c0_18 = arith.constant 0 : index
    %c0_19 = arith.constant 0 : index
    %22 = vector.load %arg2[%c3, %c0_18, %c0_19] : memref<9x8x4xbf16, #tpu.memory_space<vmem>>, vector<1x8x4xbf16>
    %23 = vector.shape_cast %22 : vector<1x8x4xbf16> to vector<8x4xbf16>
    %cst_20 = arith.constant dense<0.000000e+00> : vector<8x128xf32>
    %24 = tpu.matmul %23, %21, %cst_20 {dimension_numbers = #tpu.dot_dimension_numbers<[1], [0], [0], [1], [0, 0, 1, 1], [], []>} : vector<8x4xbf16>, vector<4x128xbf16>, vector<8x128xf32> -> vector<8x128xf32>
    %25 = arith.addf %19, %24 : vector<8x128xf32>
    %c0_21 = arith.constant 0 : index
    %c12 = arith.constant 12 : index
    %c0_22 = arith.constant 0 : index
    %26 = vector.load %arg1[%c0_21, %c12, %c0_22] : memref<1x16x128xbf16, #tpu.memory_space<vmem>>, vector<1x4x128xbf16>
    %27 = vector.shape_cast %26 : vector<1x4x128xbf16> to vector<4x128xbf16>
    %c4_23 = arith.constant 4 : index
    %c0_24 = arith.constant 0 : index
    %c0_25 = arith.constant 0 : index
    %28 = vector.load %arg2[%c4_23, %c0_24, %c0_25] : memref<9x8x4xbf16, #tpu.memory_space<vmem>>, vector<1x8x4xbf16>
    %29 = vector.shape_cast %28 : vector<1x8x4xbf16> to vector<8x4xbf16>
    %cst_26 = arith.constant dense<0.000000e+00> : vector<8x128xf32>
    %30 = tpu.matmul %29, %27, %cst_26 {dimension_numbers = #tpu.dot_dimension_numbers<[1], [0], [0], [1], [0, 0, 1, 1], [], []>} : vector<8x4xbf16>, vector<4x128xbf16>, vector<8x128xf32> -> vector<8x128xf32>
    %31 = arith.addf %25, %30 : vector<8x128xf32>
    %c0_27 = arith.constant 0 : index
    %c8_28 = arith.constant 8 : index
    %c0_29 = arith.constant 0 : index
    %32 = vector.load %arg1[%c0_27, %c8_28, %c0_29] : memref<1x16x128xbf16, #tpu.memory_space<vmem>>, vector<1x4x128xbf16>
    %33 = vector.shape_cast %32 : vector<1x4x128xbf16> to vector<4x128xbf16>
    %34 = vector.extract_strided_slice %33 {offsets = [0, 1], sizes = [4, 127], strides = [1, 1]} : vector<4x128xbf16> to vector<4x127xbf16>
    %35 = vector.extract_strided_slice %33 {offsets = [0, 0], sizes = [4, 1], strides = [1, 1]} : vector<4x128xbf16> to vector<4x1xbf16>
    %36 = tpu.concatenate %34, %35 in 1 : vector<4x127xbf16>, vector<4x1xbf16> -> vector<4x128xbf16>
    %c5 = arith.constant 5 : index
    %c0_30 = arith.constant 0 : index
    %c0_31 = arith.constant 0 : index
    %37 = vector.load %arg2[%c5, %c0_30, %c0_31] : memref<9x8x4xbf16, #tpu.memory_space<vmem>>, vector<1x8x4xbf16>
    %38 = vector.shape_cast %37 : vector<1x8x4xbf16> to vector<8x4xbf16>
    %cst_32 = arith.constant dense<0.000000e+00> : vector<8x128xf32>
    %39 = tpu.matmul %38, %36, %cst_32 {dimension_numbers = #tpu.dot_dimension_numbers<[1], [0], [0], [1], [0, 0, 1, 1], [], []>} : vector<8x4xbf16>, vector<4x128xbf16>, vector<8x128xf32> -> vector<8x128xf32>
    %40 = arith.addf %31, %39 : vector<8x128xf32>
    %c0_33 = arith.constant 0 : index
    %c0_34 = arith.constant 0 : index
    %c0_35 = arith.constant 0 : index
    %41 = vector.load %arg1[%c0_33, %c0_34, %c0_35] : memref<1x16x128xbf16, #tpu.memory_space<vmem>>, vector<1x4x128xbf16>
    %42 = vector.shape_cast %41 : vector<1x4x128xbf16> to vector<4x128xbf16>
    %43 = vector.extract_strided_slice %42 {offsets = [0, 9], sizes = [4, 119], strides = [1, 1]} : vector<4x128xbf16> to vector<4x119xbf16>
    %44 = vector.extract_strided_slice %42 {offsets = [0, 0], sizes = [4, 9], strides = [1, 1]} : vector<4x128xbf16> to vector<4x9xbf16>
    %45 = tpu.concatenate %43, %44 in 1 : vector<4x119xbf16>, vector<4x9xbf16> -> vector<4x128xbf16>
    %c6 = arith.constant 6 : index
    %c0_36 = arith.constant 0 : index
    %c0_37 = arith.constant 0 : index
    %46 = vector.load %arg2[%c6, %c0_36, %c0_37] : memref<9x8x4xbf16, #tpu.memory_space<vmem>>, vector<1x8x4xbf16>
    %47 = vector.shape_cast %46 : vector<1x8x4xbf16> to vector<8x4xbf16>
    %cst_38 = arith.constant dense<0.000000e+00> : vector<8x128xf32>
    %48 = tpu.matmul %47, %45, %cst_38 {dimension_numbers = #tpu.dot_dimension_numbers<[1], [0], [0], [1], [0, 0, 1, 1], [], []>} : vector<8x4xbf16>, vector<4x128xbf16>, vector<8x128xf32> -> vector<8x128xf32>
    %49 = arith.addf %40, %48 : vector<8x128xf32>
    %c0_39 = arith.constant 0 : index
    %c4_40 = arith.constant 4 : index
    %c0_41 = arith.constant 0 : index
    %50 = vector.load %arg1[%c0_39, %c4_40, %c0_41] : memref<1x16x128xbf16, #tpu.memory_space<vmem>>, vector<1x4x128xbf16>
    %51 = vector.shape_cast %50 : vector<1x4x128xbf16> to vector<4x128xbf16>
    %52 = vector.extract_strided_slice %51 {offsets = [0, 9], sizes = [4, 119], strides = [1, 1]} : vector<4x128xbf16> to vector<4x119xbf16>
    %53 = vector.extract_strided_slice %51 {offsets = [0, 0], sizes = [4, 9], strides = [1, 1]} : vector<4x128xbf16> to vector<4x9xbf16>
    %54 = tpu.concatenate %52, %53 in 1 : vector<4x119xbf16>, vector<4x9xbf16> -> vector<4x128xbf16>
    %c7 = arith.constant 7 : index
    %c0_42 = arith.constant 0 : index
    %c0_43 = arith.constant 0 : index
    %55 = vector.load %arg2[%c7, %c0_42, %c0_43] : memref<9x8x4xbf16, #tpu.memory_space<vmem>>, vector<1x8x4xbf16>
    %56 = vector.shape_cast %55 : vector<1x8x4xbf16> to vector<8x4xbf16>
    %cst_44 = arith.constant dense<0.000000e+00> : vector<8x128xf32>
    %57 = tpu.matmul %56, %54, %cst_44 {dimension_numbers = #tpu.dot_dimension_numbers<[1], [0], [0], [1], [0, 0, 1, 1], [], []>} : vector<8x4xbf16>, vector<4x128xbf16>, vector<8x128xf32> -> vector<8x128xf32>
    %58 = arith.addf %49, %57 : vector<8x128xf32>
    %c0_45 = arith.constant 0 : index
    %c0_46 = arith.constant 0 : index
    %c0_47 = arith.constant 0 : index
    %59 = vector.load %arg1[%c0_45, %c0_46, %c0_47] : memref<1x16x128xbf16, #tpu.memory_space<vmem>>, vector<1x4x128xbf16>
    %60 = vector.shape_cast %59 : vector<1x4x128xbf16> to vector<4x128xbf16>
    %61 = vector.extract_strided_slice %60 {offsets = [0, 10], sizes = [4, 118], strides = [1, 1]} : vector<4x128xbf16> to vector<4x118xbf16>
    %62 = vector.extract_strided_slice %60 {offsets = [0, 0], sizes = [4, 10], strides = [1, 1]} : vector<4x128xbf16> to vector<4x10xbf16>
    %63 = tpu.concatenate %61, %62 in 1 : vector<4x118xbf16>, vector<4x10xbf16> -> vector<4x128xbf16>
    %c8_48 = arith.constant 8 : index
    %c0_49 = arith.constant 0 : index
    %c0_50 = arith.constant 0 : index
    %64 = vector.load %arg2[%c8_48, %c0_49, %c0_50] : memref<9x8x4xbf16, #tpu.memory_space<vmem>>, vector<1x8x4xbf16>
    %65 = vector.shape_cast %64 : vector<1x8x4xbf16> to vector<8x4xbf16>
    %cst_51 = arith.constant dense<0.000000e+00> : vector<8x128xf32>
    %66 = tpu.matmul %65, %63, %cst_51 {dimension_numbers = #tpu.dot_dimension_numbers<[1], [0], [0], [1], [0, 0, 1, 1], [], []>} : vector<8x4xbf16>, vector<4x128xbf16>, vector<8x128xf32> -> vector<8x128xf32>
    %67 = arith.addf %58, %66 : vector<8x128xf32>
    %c0_52 = arith.constant 0 : index
    %c0_53 = arith.constant 0 : index
    %68 = vector.load %arg3[%c0_52, %c0_53] : memref<8x1xf32, #tpu.memory_space<vmem>>, vector<8x1xf32>
    %69 = vector.broadcast %68 : vector<8x1xf32> to vector<8x128xf32>
    %70 = arith.addf %67, %69 : vector<8x128xf32>
    %cst_54 = arith.constant 0.000000e+00 : f32
    %71 = vector.broadcast %cst_54 : f32 to vector<8x128xf32>
    %72 = arith.maximumf %70, %71 : vector<8x128xf32>
    %73 = arith.truncf %72 : vector<8x128xf32> to vector<8x128xbf16>
    %c0_55 = arith.constant 0 : index
    %c0_56 = arith.constant 0 : index
    %c0_57 = arith.constant 0 : index
    %74 = vector.load %arg4[%c0_55, %c0_56, %c0_57] : memref<1x8x128xbf16, #tpu.memory_space<vmem>>, vector<1x8x128xbf16>
    %75 = vector.shape_cast %74 : vector<1x8x128xbf16> to vector<8x128xbf16>
    %76 = vector.shape_cast %73 : vector<8x128xbf16> to vector<1x8x128xbf16>
    tpu.vector_store %arg4[%c0_55, %c0_56, %c0_57], %76 {strides = array<i32>} : memref<1x8x128xbf16, #tpu.memory_space<vmem>>, vector<1x8x128xbf16>,
    return
  }
  func.func @transform_0(%arg0: i32) -> (i32, i32, i32) {
    %c0_i32 = arith.constant 0 : i32
    %c0_i32_0 = arith.constant 0 : i32
    %c0_i32_1 = arith.constant 0 : i32
    return %arg0, %c0_i32, %c0_i32_0 : i32, i32, i32
  }
  func.func @transform_1(%arg0: i32) -> (i32, i32, i32) {
    %c0_i32 = arith.constant 0 : i32
    %c0_i32_0 = arith.constant 0 : i32
    %c0_i32_1 = arith.constant 0 : i32
    %c0_i32_2 = arith.constant 0 : i32
    return %c0_i32, %c0_i32_0, %c0_i32_1 : i32, i32, i32
  }
  func.func @transform_2(%arg0: i32) -> (i32, i32) {
    %c0_i32 = arith.constant 0 : i32
    %c0_i32_0 = arith.constant 0 : i32
    %c0_i32_1 = arith.constant 0 : i32
    return %c0_i32, %c0_i32_0 : i32, i32
  }
  func.func @transform_3(%arg0: i32) -> (i32, i32, i32) {
    %c0_i32 = arith.constant 0 : i32
    %c0_i32_0 = arith.constant 0 : i32
    %c0_i32_1 = arith.constant 0 : i32
    return %arg0, %c0_i32, %c0_i32_0 : i32, i32, i32
  }
}

</mosaic_0001>

<bundles_post_ra>
// kernel: tpu_custom_call.1
= control target key start
LH: loop header
LB: loop body
LE: loop exit
PB: predicated region body
PF: predicated region fallthrough
CT: control target
= control target key end

     0   :  { %6 = vsyncpa [#allocation3], 0  ;;  %s128_s0 = inlined_call_operand.hbm [shape: f32[8,128], index: 0, kind: input, shape index: {}]   ;;  %s129_s1 = inlined_call_operand.hbm [shape: f32[8,128], index: 1, kind: output, shape index: {}]  }
   0x1   :  { %7 = vsyncpa [#allocation4], 0  ;;  %s91_s6 = smov [#allocation2]   ;;  %s43_s10 = scalar_lea.hbm %s128_s0, 128 }
   0x2   :  { %s14_s7 = sshll.u32 %s91_s6, 4  ;;  %p44_p0 = scmp.ne.s32.totalorder %s128_s0, %s43_s10  ;;  %s15_s7 = int_to_ptr.vmem [resolvable:$true] %s14_s7 }
   0x3   :  { %p47_p1 = scmp.lt.u32.totalorder %s43_s10, %s128_s0 }
   0x5   :  { %p49_p2 = pnand %p47_p1, %p44_p0 }
   0x7   :  { %52 = shalt.err (!%p49_p2)
}
   0x8   :  { %s53_s15 = scalar_lea.vmem %s15_s7, 128  ;;  %p58_p4 = scmp.lt.s32.totalorder %s15_s7, %s15_s7 }
   0x9   :  { %p54_p3 = scmp.ne.s32.totalorder %s15_s7, %s53_s15  ;;  %p59_p5 = scmp.lt.s32.totalorder %s53_s15, %s53_s15 }
   0xb   :  { %p60_p6 = por %p59_p5, %p58_p4 }
   0xd   :  { %p61_p7 = pnand %p60_p6, %p54_p3 }
   0xf   :  { %64 = shalt.err (!%p61_p7)
}
  0x10   :  { %17 = dma.hbm_to_vmem [thread:$0]  %s128_s0, 128, %s15_s7, [#allocation3]  }
  0x11   :  { %87 = dma.done.wait [#allocation3], 128  }
  0x12   :  { %88 = vsyncadd [#allocation3], 4294967168  ;;  %v21_v0 = vld [vmem:[#allocation2] sm:$0xff]  ;;  %s92_s18 = smov 1   ;;  %s93_s19 = smov [#allocation5]  }
  0x13   :  { %22 = vrot.lane.b32.xlu0 %v21_v0, %s92_s18  ;;  %s31_s20 = sshll.u32 %s93_s19, 4  ;;  %s32_s20 = int_to_ptr.vmem [resolvable:$true] %s31_s20 }
  0x14   :  { %s65_s21 = scalar_lea.vmem %s32_s20, 128  ;;  %p70_p9 = scmp.lt.s32.totalorder %s32_s20, %s32_s20 }
  0x15   :  { %p66_p8 = scmp.ne.s32.totalorder %s32_s20, %s65_s21  ;;  %p71_p10 = scmp.lt.s32.totalorder %s65_s21, %s65_s21 }
  0x17   :  { %p72_p11 = por %p71_p10, %p70_p9 }
  0x19   :  { %p73_p12 = pnand %p72_p11, %p66_p8 }
  0x85   :  { %v23_v1 = vpop.permute.xlu0 %22 }
  0x86   :  { %24 = vst [vmem:[#allocation5] sm:$0xff] %v23_v1 }
  0x87   :  { %76 = shalt.err (!%p73_p12)
}
  0x88   :  { %s77_s0 = scalar_lea.hbm %s129_s1, 128 }
  0x89   :  { %p78_p13 = scmp.ne.s32.totalorder %s129_s1, %s77_s0  ;;  %p81_p0 = scmp.lt.u32.totalorder %s77_s0, %s129_s1 }
  0x8b   :  { %p83_p1 = pnand %p81_p0, %p78_p13 }
  0x8d   :  { %86 = shalt.err (!%p83_p1)
}
  0x8e   :  { %34 = dma.vmem_to_hbm [thread:$0]  %s32_s20, 128, %s129_s1, [#allocation4]  }
  0x8f   :  { %89 = dma.done.wait [#allocation4], 128  }
  0x90   :  { %90 = vsyncadd [#allocation4], 4294967168 }
  0x91   :  { %38 = vsyncpa [#allocation3], 1 }
  0x92   :  { %39 = vsyncpa [#allocation4], 1 }

// kernel: a_call__.1
= control target key start
LH: loop header
LB: loop body
LE: loop exit
PB: predicated region body
PF: predicated region fallthrough
CT: control target
= control target key end

     0   :  { %s862_s12 = smov 0   ;;  %s964_s0 = inlined_call_operand.vmem [shape: bf16[2,16,128], index: 0, kind: input, shape index: {}]   ;;  %s965_s1 = inlined_call_operand.vmem [shape: bf16[9,8,4], index: 1, kind: input, shape index: {}]   ;;  %s966_s2 = inlined_call_operand.vmem [shape: f32[8,1], index: 2, kind: input, shape index: {}]   ;;  %s967_s3 = inlined_call_operand.vmem [shape: bf16[2,8,128], index: 3, kind: output, shape index: {}]  }
   0x1 LB: > { %s704_s13 = sadd.s32 4294967295, %s834_s12   ;;  %p708_p0 = scmp.ge.s32.totalorder %s834_s12, 1  ;;  %s834_s12 = sphi %s862_s12, %s13_s12  }
   0x2   : > { %p137_p1 = scmp.lt.s32.totalorder %s834_s12, 3 }
   0x4   : > { %p138_p2 = pnand %p708_p0, %p137_p1 }
   0x5   : > { %p160_p3 = scmp.lt.s32.totalorder (!%p138_p2), %s704_s13, 1  ;;  %v836_v0 = vmov (!%p138_p2), 0.0   ;;  %vm837_vm0 = vmmov (!%p138_p2), 0   ;;  %vm183_vm1 = vcmask (!%p138_p2), 1041408   ;;  %v171_v6 = vld [vmem:[%s965_s1] sm:$0xf] (!%p138_p2) }
   0x6   : > { %141 = sbr.rel (%p138_p2) target bundleno = 383 (0x17f), region = 32  ;;  %754 = vmatprep.subr.bf16.mxu0 (!%p138_p2), %v836_v0  ;;  %760 = vmatprep.subr.bf16.mxu1 (!%p138_p2), %v836_v0  ;;  %s838_s20 = smov (!%p138_p2), 127   ;;  %vm179_vm2 = vcmask (!%p138_p2), 31744   ;;  %v712_v11 = vld [vmem:[%s965_s1 + $0x4] sm:$0xf] (!%p138_p2)  ;;  %v841_v14 = vmov (!%p138_p2), 0  }
   0x7   : > { %756 = vmatprep.mubr.msk.bf16.mxu0 (!%p138_p2), %vm837_vm0, %v836_v0  ;;  %762 = vmatprep.mubr.msk.bf16.mxu1 (!%p138_p2), %vm837_vm0, %v836_v0  ;;  %s839_s21 = smov (!%p138_p2), 119   ;;  %v719_v12 = vld [vmem:[%s965_s1 + $0xc] sm:$0xf] (!%p138_p2)  ;;  %s840_s26 = smov (!%p138_p2), 118   ;;  %v641_v13 = vld [vmem:[%s966_s2] sm:$0xff] (!%p138_p2) }
   0x8   : > { %822 = vset.pattern.permute.xlu1 (!%p138_p2), %v841_v14  ;;  %823 = vset.pattern.permute.xlu0 (!%p138_p2), %v841_v14  ;;  %v717_v20 = vld [vmem:[%s965_s1 + $0x8] sm:$0xf] (!%p138_p2)  ;;  %v725_v26 = vld [vmem:[%s965_s1 + $0x14] sm:$0xf] (!%p138_p2)  ;;  %v721_v28 = vld [vmem:[%s965_s1 + $0x10] sm:$0xf] (!%p138_p2) }
   0x9   : > { %v729_v30 = vld [vmem:[%s965_s1 + $0x1c] sm:$0xf] (!%p138_p2)  ;;  %v727_v32 = vld [vmem:[%s965_s1 + $0x18] sm:$0xf] (!%p138_p2)  ;;  %v731_v34 = vld [vmem:[%s965_s1 + $0x20] sm:$0xf] (!%p138_p2) }
   0xd   : > { %s969_s13 = smov (!%p160_p3, %s704_s13), 1 }
   0xe   : > { %s735_s14 = sshll.u32 %s969_s13, 3  ;;  %s711_s16 = sshll.u32 %s969_s13, 2 }
   0xf   : > { %s882_s17 = scalar_lea.vmem %s964_s0, %s735_s14  ;;  %s168_s19 = scalar_lea.vmem %s967_s3, %s711_s16 }
  0x10   : > { %v170_v1 = vld [vmem:[%s882_s17] sm:$0x3]  ;;  %v327_v2 = vld [vmem:[%s882_s17 + $0x4] sm:$0x3] }
  0x11   : > { %v716_v3 = vcombine.low %v170_v1, %v170_v1  ;;  %v826_v4 = vld [vmem:[%s882_s17] ss:$0 sps:$4 sm:$0xcc]   ;;  %v231_v5 = vsel %vm183_vm1, %v170_v1, 0  ;;  %v724_v7 = vcombine.low %v327_v2, %v327_v2  ;;  %v334_v9 = vsel %vm183_vm1, %v327_v2, 0 }
  0x12   : > { %761 = vmatpush3.bf16.msra.mxu1 %v231_v5  ;;  %v178_v8 = vrot.slane %v826_v4, 2  ;;  %v827_v15 = vld [vmem:[%s882_s17 + $0x4] ss:$0 sps:$4 sm:$0xcc]  }
  0x13   : > { %276 = vrot.lane.b32.xlu0 %v716_v3, %s838_s20  ;;  %485 = vrot.lane.b32.xlu1 %v716_v3, %s839_s21  ;;  %v383_v16 = vrot.slane %v827_v15, 2 }
  0x14   : > { %772 = vmatprep.subr.bf16.mxu1 %v836_v0  ;;  %v185_v10 = vsel %vm183_vm1, %v178_v8, 0 }
  0x15   : > { %763 = vmatmul.mubr.msk.bf16.vlgmr.msra.gmra.mrb[0].mxu1 %vm179_vm2, %v171_v6  ;;  %755 = vmatpush3.bf16.msra.mxu0 %v185_v10  ;;  %v388_v21 = vsel %vm183_vm1, %v383_v16, 0 }
  0x16   : > { %773 = vmatpush3.bf16.msra.mxu1 %v334_v9  ;;  %766 = vmatprep.subr.bf16.mxu0 %v836_v0 }
  0x17   : > { %434 = vrot.lane.b32.xlu0 %v724_v7, %s838_s20  ;;  %536 = vrot.lane.b32.xlu1 %v826_v4, %s839_s21 }
  0x18   : > { %774 = vmatprep.mubr.msk.bf16.mxu1 %vm837_vm0, %v836_v0  ;;  %757 = vmatmul.mubr.msk.bf16.vlgmr.msra.gmra.mrb[0].mxu0 %vm179_vm2, %v712_v11 }
  0x19   : > { %784 = vmatprep.subr.bf16.mxu1 %v836_v0  ;;  %768 = vmatprep.mubr.msk.bf16.mxu0 %vm837_vm0, %v836_v0 }
  0x1b   : > { %590 = vrot.lane.b32.xlu0 %v716_v3, %s840_s26  ;;  %644 = vperm.xlu1 %822, %v641_v13  }
  0x1d   : > { %775 = vmatmul.mubr.msk.bf16.vlgmr.msra.gmra.mrb[4].mxu1 %vm179_vm2, %v719_v12 }
  0x1e   : > { %786 = vmatprep.mubr.msk.bf16.mxu1 %vm837_vm0, %v836_v0 }
  0x85   : > { %v277_v17 = vpop.permute.xlu0 %276  ;;  %v486_v18 = vpop.permute.xlu1 %485 }
  0x86   : > { %v284_v19 = vsel %vm183_vm1, %v277_v17, 0  ;;  %v493_v29 = vsel %vm183_vm1, %v486_v18, 0 }
  0x87   : > { %767 = vmatpush3.bf16.msra.mxu0 %v284_v19 }
  0x88   : > { %778 = vmatprep.subr.bf16.mxu0 %v836_v0 }
  0x89   : > { %v435_v22 = vpop.permute.xlu0 %434  ;;  %v537_v23 = vpop.permute.xlu1 %536 }
  0x8a   : > { %769 = vmatmul.mubr.msk.bf16.vlgmr.msra.gmra.mrb[4].mxu0 %vm179_vm2, %v717_v20  ;;  %v442_v24 = vsel %vm183_vm1, %v435_v22, 0  ;;  %v542_v25 = vrot.slane %v537_v23, 2 }
  0x8b   : > { %779 = vmatpush3.bf16.msra.mxu0 %v388_v21  ;;  %780 = vmatprep.mubr.msk.bf16.mxu0 %vm837_vm0, %v836_v0 }
  0x8c   : > { %785 = vmatpush3.bf16.msra.mxu1 %v442_v24  ;;  %790 = vmatprep.subr.bf16.mxu0 %v836_v0  ;;  %v547_v27 = vsel %vm183_vm1, %v542_v25, 0 }
  0x8d   : > { %796 = vmatprep.subr.bf16.mxu1 %v836_v0  ;;  %v591_v31 = vpop.permute.xlu0 %590 }
  0x8e   : > { %v598_v33 = vsel %vm183_vm1, %v591_v31, 0 }
  0x8f   : > { %787 = vmatmul.mubr.msk.bf16.vlgmr.msra.gmra.mrb[8].mxu1 %vm179_vm2, %v725_v26 }
  0x90   : > { %797 = vmatpush3.bf16.msra.mxu1 %v547_v27  ;;  %798 = vmatprep.mubr.msk.bf16.mxu1 %vm837_vm0, %v836_v0 }
  0x92   : > { %781 = vmatmul.mubr.msk.bf16.vlgmr.msra.gmra.mrb[8].mxu0 %vm179_vm2, %v721_v28 }
  0x93   : > { %791 = vmatpush3.bf16.msra.mxu0 %v493_v29  ;;  %792 = vmatprep.mubr.msk.bf16.mxu0 %vm837_vm0, %v836_v0 }
  0x94   : > { %802 = vmatprep.subr.bf16.mxu0 %v836_v0 }
  0x97   : > { %799 = vmatmul.mubr.msk.bf16.vlgmr.msra.gmra.mrb[12].mxu1 %vm179_vm2, %v729_v30 }
  0x9a   : > { %793 = vmatmul.mubr.msk.bf16.vlgmr.msra.gmra.mrb[12].mxu0 %vm179_vm2, %v727_v32  ;;  %v645_v11 = vpop.permute.xlu1 %644 }
  0x9b   : > { %803 = vmatpush3.bf16.msra.mxu0 %v598_v33  ;;  %804 = vmatprep.mubr.msk.bf16.mxu0 %vm837_vm0, %v836_v0 }
  0xa2   : > { %805 = vmatmul.mubr.msk.bf16.vlgmr.msra.gmra.mrb[16].mxu0 %vm179_vm2, %v731_v34 }
  0xe8   : > { %v267_v35 = vpop.f32.mrb[0].mxu1 }
  0xe9   : > { %v764_v36 = vpop.f32.mrb[1].mxu1 }
  0xea   : > { %v270_v37 = vpop.f32.mrb[2].mxu1 }
  0xeb   : > { %v765_v38 = vpop.f32.mrb[3].mxu1  ;;  %v221_v39 = vpop.f32.mrb[0].mxu0 }
  0xec   : > { %v758_v40 = vpop.f32.mrb[1].mxu0  ;;  %v268_v41 = vadd.f32 %v267_v35, %v221_v39 }
  0xed   : > { %v224_v42 = vpop.f32.mrb[2].mxu0 }
  0xee   : > { %v759_v43 = vpop.f32.mrb[3].mxu0 }
  0xf0   : > { %v370_v44 = vpop.f32.mrb[4].mxu1 }
  0xf1   : > { %v776_v45 = vpop.f32.mrb[5].mxu1 }
  0xf2   : > { %v373_v46 = vpop.f32.mrb[6].mxu1 }
  0xf3   : > { %v777_v47 = vpop.f32.mrb[7].mxu1 }
 0x15d   : > { %v320_v48 = vpop.f32.mrb[4].mxu0 }
 0x15e   : > { %v326_v49 = vadd.f32 %v320_v48, %v268_v41  ;;  %v770_v50 = vpop.f32.mrb[5].mxu0 }
 0x15f   : > { %v323_v51 = vpop.f32.mrb[6].mxu0 }
 0x160   : > { %v376_v52 = vadd.f32 %v370_v44, %v326_v49  ;;  %v771_v53 = vpop.f32.mrb[7].mxu0 }
 0x162   : > { %v478_v54 = vpop.f32.mrb[8].mxu1 }
 0x163   : > { %v788_v55 = vpop.f32.mrb[9].mxu1 }
 0x164   : > { %v481_v56 = vpop.f32.mrb[10].mxu1 }
 0x165   : > { %v424_v57 = vpop.f32.mrb[8].mxu0  ;;  %v789_v58 = vpop.f32.mrb[11].mxu1 }
 0x166   : > { %v430_v59 = vadd.f32 %v424_v57, %v376_v52  ;;  %v782_v60 = vpop.f32.mrb[9].mxu0 }
 0x167   : > { %v427_v61 = vpop.f32.mrb[10].mxu0 }
 0x168   : > { %v484_v62 = vadd.f32 %v478_v54, %v430_v59  ;;  %v783_v63 = vpop.f32.mrb[11].mxu0 }
 0x16a   : > { %v583_v0 = vpop.f32.mrb[12].mxu1 }
 0x16b   : > { %v800_v1 = vpop.f32.mrb[13].mxu1 }
 0x16c   : > { %v586_v2 = vpop.f32.mrb[14].mxu1 }
 0x16d   : > { %v529_v3 = vpop.f32.mrb[12].mxu0  ;;  %v801_v4 = vpop.f32.mrb[15].mxu1 }
 0x16e   : > { %v535_v5 = vadd.f32 %v529_v3, %v484_v62  ;;  %v794_v6 = vpop.f32.mrb[13].mxu0 }
 0x16f   : > { %v532_v7 = vpop.f32.mrb[14].mxu0 }
 0x170   : > { %v589_v8 = vadd.f32 %v583_v0, %v535_v5  ;;  %v795_v9 = vpop.f32.mrb[15].mxu0 }
 0x175   : > { %v634_v10 = vpop.f32.mrb[16].mxu0 }
 0x176   : > { %v640_v12 = vadd.f32 %v634_v10, %v589_v8  ;;  %v806_v13 = vpop.f32.mrb[17].mxu0 }
 0x177   : > { %v637_v14 = vpop.f32.mrb[18].mxu0 }
 0x178   : > { %v647_v15 = vadd.f32 %v645_v11, %v640_v12  ;;  %v807_v16 = vpop.f32.mrb[19].mxu0 }
 0x17a   : > { %v648_v17 = vmax.f32 %v647_v15, 0.0 }
 0x17c   : > { %v649_v18 = vpack.c.bf16 %v648_v17, %v648_v17 }
 0x17e   : > { %650 = vst [vmem:[%s168_s19] sm:$0xf] %v649_v18 }
 0x17f PF: > { %s13_s12 = sadd.s32 1, %s834_s12  }
 0x180   : > { %p10_p4 = scmp.ge.s32.totalorder %s13_s12, 4  }
 0x182   :  { %12 = sbr.rel (!%p10_p4) target bundleno = 1 (0x1), region = 70 }

</bundles_post_ra>
